<compile_context>
chip_gen: v7x
topology: tpu7x:2x2x1
jax: 0.10.0
libtpu: 0.0.40
codegen_flags: <defaults>
</compile_context>

<pallas_src>
import functools

import jax
import jax.numpy as jnp
from jax import lax
from jax.experimental import pallas as pl
from jax.experimental.pallas import tpu as pltpu


def _simcse_kernel(xq_ref, xp_ref, xk_ref, loss_ref, *, scale, matmul_dtype):
    """One query-row block: loss_ref[r] = logsumexp(logits[r, :]) - target_logit[r]."""
    i = pl.program_id(0)
    tm = xq_ref.shape[0]            # query rows in this block
    nk = xk_ref.shape[0]            # full batch size B

    xq = xq_ref[...].astype(jnp.float32)     # (tm, D) query rows
    xp = xp_ref[...].astype(jnp.float32)     # (tm, D) paired rows (pre-swapped copy)
    xk = xk_ref[...].astype(jnp.float32)     # (B,  D) all rows (keys)

    # Row normalization via rsqrt + multiply (eps matches torch's 1e-8 norm clamp).
    qn = xq * lax.rsqrt(jnp.maximum(jnp.sum(xq * xq, axis=-1, keepdims=True), 1e-16))
    pn = xp * lax.rsqrt(jnp.maximum(jnp.sum(xp * xp, axis=-1, keepdims=True), 1e-16))
    kn = xk * lax.rsqrt(jnp.maximum(jnp.sum(xk * xk, axis=-1, keepdims=True), 1e-16))

    # Cosine-similarity slab on the MXU: contraction on the last dim of both
    # operands (no explicit transpose). Operands optionally bf16, accumulation f32.
    sim = lax.dot_general(
        qn.astype(matmul_dtype),
        kn.astype(matmul_dtype),
        dimension_numbers=(((1,), (1,)), ((), ())),
        preferred_element_type=jnp.float32,
    )                                                       # (tm, B) f32

    # Fused diagonal mask + temperature: one select + one multiply over the slab.
    row_g = i * tm + lax.broadcasted_iota(jnp.int32, (tm, nk), 0)
    col_g = lax.broadcasted_iota(jnp.int32, (tm, nk), 1)
    logits = jnp.where(row_g == col_g, jnp.float32(-1e12), sim) * jnp.float32(scale)

    # Target logit: scaled cosine sim with the paired row, as a direct O(tm*D)
    # f32 pair dot product (no O(tm*B) iota/mod/select/reduce over the slab).
    tgt = jnp.float32(scale) * jnp.sum(qn * pn, axis=-1, keepdims=True)   # (tm, 1)

    # Row-wise logsumexp in f32 and the per-row cross-entropy contribution.
    m = jnp.max(logits, axis=-1, keepdims=True)
    lse = m + jnp.log(jnp.sum(jnp.exp(logits - m), axis=-1, keepdims=True))
    loss_ref[...] = lse - tgt


def _choose_block_rows(batch, target):
    """Largest multiple of 8 <= target that divides batch; else the whole batch."""
    if batch <= target:
        return batch
    tm = (target // 8) * 8
    while tm >= 8:
        if batch % tm == 0:
            return tm
        tm -= 8
    return batch


@functools.partial(jax.jit, static_argnames=("scale", "block_rows", "matmul_dtype"))
def simcse_loss(inputs, scale=20.0, *, block_rows=256, matmul_dtype=jnp.bfloat16):
    """SimCSE loss: sum_i CE(scale * masked_cos_sim(x)[i, :], pair(i)).

    inputs: (B, D) with B even — rows (2k, 2k+1) are the two views of sentence k.
    matmul_dtype: MXU operand dtype for the (TM,D)x(D,B) contraction (bf16 by
      default for v6e/v7x throughput; accumulation is always f32).
    """
    B, D = inputs.shape
    if B % 2 != 0:
        raise ValueError("SimCSE batch size must be even (paired sentence views).")

    tm = _choose_block_rows(B, block_rows)
    nb = B // tm

    # Pair-swapped view of the inputs (row 2k <-> 2k+1): wrapper-side layout
    # plumbing so the in-kernel target logit is a row-aligned elementwise dot.
    x_pair = inputs.reshape(B // 2, 2, D)[:, ::-1, :].reshape(B, D)

    itemsize = jnp.dtype(inputs.dtype).itemsize
    mm_itemsize = jnp.dtype(matmul_dtype).itemsize

    # Explicit VMEM budget: double-buffered query/partner blocks, resident key
    # operand, f32/matmul-dtype temporaries and one (tm, B) logits slab. Capped
    # at 48 MiB so the same tiling fits v7x (64 MiB physical) as well as
    # v5e/v6e (128 MiB); floored at 32 MiB so small problems keep headroom.
    est = (
        2 * 2 * tm * D * itemsize        # double-buffered query + partner blocks
        + 2 * B * D * itemsize           # key operand (revisited, single DMA)
        + 2 * tm * 4                     # per-row output block
        + (2 * tm + B) * D * 4           # f32 normalized copies
        + (tm + B) * D * mm_itemsize     # matmul-dtype operands
        + 4 * tm * B * 4                 # sim / logits / exp temporaries
    )
    vmem_limit = int(min(48 * 1024 * 1024, max(32 * 1024 * 1024, 2 * est)))
    # TODO(synk): for very large B the resident (B, D) key operand outgrows the
    # VMEM budget; that regime needs a second (column) grid axis with an
    # online-softmax accumulator.

    kernel = functools.partial(
        _simcse_kernel, scale=float(scale), matmul_dtype=matmul_dtype)

    per_row = pl.pallas_call(
        kernel,
        out_shape=jax.ShapeDtypeStruct((B, 1), jnp.float32),
        grid=(nb,),
        in_specs=[
            pl.BlockSpec((tm, D), lambda i: (i, 0)),   # query row block (pipelined)
            pl.BlockSpec((tm, D), lambda i: (i, 0)),   # paired rows (pipelined)
            pl.BlockSpec((B, D), lambda i: (0, 0)),    # all rows, revisited
        ],
        out_specs=pl.BlockSpec((tm, 1), lambda i: (i, 0)),
        compiler_params=pltpu.CompilerParams(
            dimension_semantics=("parallel",),         # megacore-shard row blocks (v7x)
            vmem_limit_bytes=vmem_limit,
        ),
        cost_estimate=pl.CostEstimate(
            flops=2 * B * B * D + 12 * B * D,
            transcendentals=B * B + 4 * B,
            bytes_accessed=3 * B * D * itemsize + B * 4,
        ),
    )(inputs, x_pair, inputs)

    return jnp.sum(per_row)                            # reduction='sum'


def simcse_loss_ref(inputs, scale=20.0):
    """Pure-JAX f32 reference mirroring the PyTorch module."""
    x = inputs.astype(jnp.float32)
    B = x.shape[0]
    idxs = jnp.arange(B).reshape(-1, 2)
    y_true = jnp.concatenate([idxs[:, 1:], idxs[:, :1]], axis=1).reshape(-1)
    xn = x / jnp.maximum(jnp.linalg.norm(x, axis=-1, keepdims=True), 1e-8)
    sim = xn @ xn.T
    sim = sim - jnp.eye(B) * 1e12
    sim = sim * scale
    lse = jax.scipy.special.logsumexp(sim, axis=-1)
    return jnp.sum(lse - sim[jnp.arange(B), y_true])


if __name__ == "__main__":
    key = jax.random.PRNGKey(0)
    B, D = 64, 128        # small, but big enough to exercise a 4-step row grid
    x = jax.random.normal(key, (B, D), dtype=jnp.float32)

    ref = simcse_loss_ref(x, scale=20.0)

    # Tiled path (4 row blocks), f32 MXU operands: tight check vs the reference.
    loss_f32 = jax.block_until_ready(
        simcse_loss(x, scale=20.0, block_rows=16, matmul_dtype=jnp.float32))
    assert jnp.allclose(loss_f32, ref, rtol=2e-3, atol=2e-2), (loss_f32, ref)

    # Tiled path, default bf16 MXU operands (f32 accumulation): bf16-level check.
    loss_bf16 = jax.block_until_ready(simcse_loss(x, scale=20.0, block_rows=16))
    assert jnp.allclose(loss_bf16, ref, rtol=5e-2, atol=5e-1), (loss_bf16, ref)

    # Single-block path (block_rows >= B) is also exercised.
    loss_single = jax.block_until_ready(
        simcse_loss(x, scale=20.0, matmul_dtype=jnp.float32))
    assert jnp.allclose(loss_single, ref, rtol=2e-3, atol=2e-2), (loss_single, ref)

    print("KERNEL_OK")
</pallas_src>

<mosaic_0001>
module attributes {stable_mosaic.version = 11 : i64} {
  func.func @_simcse_kernel(%arg0: i32, %arg1: memref<16x128xf32, #tpu.memory_space<vmem>>, %arg2: memref<16x128xf32, #tpu.memory_space<vmem>>, %arg3: memref<64x128xf32, #tpu.memory_space<vmem>>, %arg4: memref<16x1xf32, #tpu.memory_space<vmem>>) attributes {dimension_semantics = [#tpu.dimension_semantics<parallel>], iteration_bounds = array<i64: 4>, scalar_prefetch = 0 : i64, scratch_operands = 0 : i64, tpu.core_type = #tpu.core_type<tc>, window_params = [{transform_indices = @transform_0, window_bounds = array<i64: 16, 128>}, {transform_indices = @transform_1, window_bounds = array<i64: 16, 128>}, {pipeline_mode = #tpu.pipeline_mode<synchronous>, transform_indices = @transform_2, window_bounds = array<i64: 64, 128>}, {transform_indices = @transform_3, window_bounds = array<i64: 16, 1>}]} {
    %c0 = arith.constant 0 : index
    %c0_0 = arith.constant 0 : index
    %0 = vector.load %arg1[%c0, %c0_0] : memref<16x128xf32, #tpu.memory_space<vmem>>, vector<16x128xf32>
    %c0_1 = arith.constant 0 : index
    %c0_2 = arith.constant 0 : index
    %1 = vector.load %arg2[%c0_1, %c0_2] : memref<16x128xf32, #tpu.memory_space<vmem>>, vector<16x128xf32>
    %c0_3 = arith.constant 0 : index
    %c0_4 = arith.constant 0 : index
    %2 = vector.load %arg3[%c0_3, %c0_4] : memref<64x128xf32, #tpu.memory_space<vmem>>, vector<64x128xf32>
    %3 = arith.mulf %0, %0 : vector<16x128xf32>
    %cst = arith.constant dense<0.000000e+00> : vector<16xf32>
    %4 = vector.multi_reduction <add>, %3, %cst [1] : vector<16x128xf32> to vector<16xf32>
    %5 = vector.shape_cast %4 : vector<16xf32> to vector<16x1xf32>
    %cst_5 = arith.constant 1.000000e-16 : f32
    %6 = vector.broadcast %cst_5 : f32 to vector<16x1xf32>
    %7 = arith.maximumf %5, %6 : vector<16x1xf32>
    %8 = math.rsqrt %7 : vector<16x1xf32>
    %9 = vector.broadcast %8 : vector<16x1xf32> to vector<16x128xf32>
    %10 = arith.mulf %0, %9 : vector<16x128xf32>
    %11 = arith.mulf %1, %1 : vector<16x128xf32>
    %cst_6 = arith.constant dense<0.000000e+00> : vector<16xf32>
    %12 = vector.multi_reduction <add>, %11, %cst_6 [1] : vector<16x128xf32> to vector<16xf32>
    %13 = vector.shape_cast %12 : vector<16xf32> to vector<16x1xf32>
    %cst_7 = arith.constant 1.000000e-16 : f32
    %14 = vector.broadcast %cst_7 : f32 to vector<16x1xf32>
    %15 = arith.maximumf %13, %14 : vector<16x1xf32>
    %16 = math.rsqrt %15 : vector<16x1xf32>
    %17 = vector.broadcast %16 : vector<16x1xf32> to vector<16x128xf32>
    %18 = arith.mulf %1, %17 : vector<16x128xf32>
    %19 = arith.mulf %2, %2 : vector<64x128xf32>
    %cst_8 = arith.constant dense<0.000000e+00> : vector<64xf32>
    %20 = vector.multi_reduction <add>, %19, %cst_8 [1] : vector<64x128xf32> to vector<64xf32>
    %21 = vector.shape_cast %20 : vector<64xf32> to vector<64x1xf32>
    %cst_9 = arith.constant 1.000000e-16 : f32
    %22 = vector.broadcast %cst_9 : f32 to vector<64x1xf32>
    %23 = arith.maximumf %21, %22 : vector<64x1xf32>
    %24 = math.rsqrt %23 : vector<64x1xf32>
    %25 = vector.broadcast %24 : vector<64x1xf32> to vector<64x128xf32>
    %26 = arith.mulf %2, %25 : vector<64x128xf32>
    %cst_10 = arith.constant dense<0.000000e+00> : vector<16x64xf32>
    %27 = tpu.matmul %10, %26, %cst_10 {dimension_numbers = #tpu.dot_dimension_numbers<[1], [1], [0], [0], [0, 0, 1, 0], [], []>} : vector<16x128xf32>, vector<64x128xf32>, vector<16x64xf32> -> vector<16x64xf32>
    %c16_i32 = arith.constant 16 : i32
    %28 = arith.muli %arg0, %c16_i32 : i32
    %29 = tpu.iota {dimensions = array<i32: 0>} : vector<16x64xi32>
    %30 = vector.broadcast %28 : i32 to vector<16x64xi32>
    %31 = arith.addi %30, %29 : vector<16x64xi32>
    %32 = tpu.iota {dimensions = array<i32: 1>} : vector<16x64xi32>
    %33 = arith.cmpi eq, %31, %32 : vector<16x64xi32>
    %cst_11 = arith.constant -9.99999995E+11 : f32
    %34 = vector.broadcast %cst_11 : f32 to vector<16x64xf32>
    %35 = arith.select %33, %34, %27 : vector<16x64xi1>, vector<16x64xf32>
    %cst_12 = arith.constant 2.000000e+01 : f32
    %36 = vector.broadcast %cst_12 : f32 to vector<16x64xf32>
    %37 = arith.mulf %35, %36 : vector<16x64xf32>
    %38 = arith.mulf %10, %18 : vector<16x128xf32>
    %cst_13 = arith.constant dense<0.000000e+00> : vector<16xf32>
    %39 = vector.multi_reduction <add>, %38, %cst_13 [1] : vector<16x128xf32> to vector<16xf32>
    %40 = vector.shape_cast %39 : vector<16xf32> to vector<16x1xf32>
    %cst_14 = arith.constant 2.000000e+01 : f32
    %41 = vector.broadcast %cst_14 : f32 to vector<16x1xf32>
    %42 = arith.mulf %41, %40 : vector<16x1xf32>
    %cst_15 = arith.constant dense<0xFF800000> : vector<16xf32>
    %43 = vector.multi_reduction <maximumf>, %37, %cst_15 [1] : vector<16x64xf32> to vector<16xf32>
    %44 = vector.shape_cast %43 : vector<16xf32> to vector<16x1xf32>
    %45 = vector.broadcast %44 : vector<16x1xf32> to vector<16x64xf32>
    %46 = arith.subf %37, %45 : vector<16x64xf32>
    %47 = math.exp %46 : vector<16x64xf32>
    %cst_16 = arith.constant dense<0.000000e+00> : vector<16xf32>
    %48 = vector.multi_reduction <add>, %47, %cst_16 [1] : vector<16x64xf32> to vector<16xf32>
    %49 = vector.shape_cast %48 : vector<16xf32> to vector<16x1xf32>
    %50 = math.log %49 : vector<16x1xf32>
    %51 = arith.addf %44, %50 : vector<16x1xf32>
    %52 = arith.subf %51, %42 : vector<16x1xf32>
    %c0_17 = arith.constant 0 : index
    %c0_18 = arith.constant 0 : index
    %53 = vector.load %arg4[%c0_17, %c0_18] : memref<16x1xf32, #tpu.memory_space<vmem>>, vector<16x1xf32>
    tpu.vector_store %arg4[%c0_17, %c0_18], %52 {strides = array<i32>} : memref<16x1xf32, #tpu.memory_space<vmem>>, vector<16x1xf32>,
    return
  }
  func.func @transform_0(%arg0: i32) -> (i32, i32) {
    %c0_i32 = arith.constant 0 : i32
    %c0_i32_0 = arith.constant 0 : i32
    return %arg0, %c0_i32 : i32, i32
  }
  func.func @transform_1(%arg0: i32) -> (i32, i32) {
    %c0_i32 = arith.constant 0 : i32
    %c0_i32_0 = arith.constant 0 : i32
    return %arg0, %c0_i32 : i32, i32
  }
  func.func @transform_2(%arg0: i32) -> (i32, i32) {
    %c0_i32 = arith.constant 0 : i32
    %c0_i32_0 = arith.constant 0 : i32
    %c0_i32_1 = arith.constant 0 : i32
    return %c0_i32, %c0_i32_0 : i32, i32
  }
  func.func @transform_3(%arg0: i32) -> (i32, i32) {
    %c0_i32 = arith.constant 0 : i32
    %c0_i32_0 = arith.constant 0 : i32
    return %arg0, %c0_i32 : i32, i32
  }
}

</mosaic_0001>

<bundles_post_ra>
// kernel: simcse_loss.1
= control target key start
LH: loop header
LB: loop body
LE: loop exit
PB: predicated region body
PF: predicated region fallthrough
CT: control target
= control target key end

     0   :  { %s603_s12 = smov 0   ;;  %s699_s0 = inlined_call_operand.vmem [shape: f32[64,128], index: 0, kind: input, shape index: {}, may-alias: {0,2}]   ;;  %s700_s1 = inlined_call_operand.vmem [shape: f32[64,128], index: 1, kind: input, shape index: {}]   ;;  %s701_s2 = inlined_call_operand.vmem [shape: f32[64,128], index: 2, kind: input, shape index: {}, may-alias: {0,2}]   ;;  %s702_s3 = inlined_call_operand.vmem [shape: f32[64,1], index: 3, kind: output, shape index: {}]  }
   0x1 LB: > { %s476_s13 = sadd.s32 4294967295, %s581_s12   ;;  %p480_p0 = scmp.ge.s32.totalorder %s581_s12, 1  ;;  %s581_s12 = sphi %s603_s12, %s13_s12  }
   0x2   : > { %p149_p1 = scmp.lt.s32.totalorder %s581_s12, 5 }
   0x4   : > { %p150_p2 = pnand %p480_p0, %p149_p1 }
   0x5   : > { %v614_v0 = vld [vmem:[%s701_s2] sm:$0xff] (!%p150_p2)  ;;  %v202_v1 = vld [vmem:[%s701_s2 + $0x10] sm:$0xff] (!%p150_p2)  ;;  %v622_v2 = vld [vmem:[%s701_s2 + $0x8] sm:$0xff] (!%p150_p2)  ;;  %s481_s20 = sshll.u32 (!%p150_p2), %s476_s13, 1  ;;  %s487_s8 = sshll.u32 (!%p150_p2), %s476_s13, 4  ;;  %vm378_vm2 = vcmask (!%p150_p2), 523264  }
   0x6   : > { %153 = sbr.rel (%p150_p2) target bundleno = 738 (0x2e2), region = 32  ;;  %v232_v3 = vmul.f32 (!%p150_p2), %v614_v0, %v614_v0  ;;  %v234_v4 = vmul.f32 (!%p150_p2), %v202_v1, %v202_v1  ;;  %v203_v5 = vld [vmem:[%s701_s2 + $0x18] sm:$0xff] (!%p150_p2)  ;;  %p179_p3 = scmp.lt.s32.totalorder (!%p150_p2), %s481_s20, 7  ;;  %v233_v6 = vmul.f32 (!%p150_p2), %v622_v2, %v622_v2  ;;  %v636_v8 = vld [vmem:[%s701_s2 + $0x28] sm:$0xff] (!%p150_p2)  ;;  %v641_v9 = vld [vmem:[%s701_s2 + $0x20] sm:$0xff] (!%p150_p2)  ;;  %vm405_vm3 = vcmask (!%p150_p2), 7168  }
   0x7   : > { %v235_v7 = vmul.f32 (!%p150_p2), %v203_v5, %v203_v5  ;;  %v237_v10 = vmul.f32 (!%p150_p2), %v636_v8, %v636_v8  ;;  %v236_v11 = vmul.f32 (!%p150_p2), %v641_v9, %v641_v9  ;;  %v652_v12 = vld [vmem:[%s701_s2 + $0x38] sm:$0xff] (!%p150_p2)  ;;  %v657_v13 = vld [vmem:[%s701_s2 + $0x30] sm:$0xff] (!%p150_p2) }
   0x8   : > { %240 = vadd.xlane.f32.xlu0 (!%p150_p2), %v232_v3  ;;  %244 = vadd.xlane.f32.xlu1 (!%p150_p2), %v234_v4  ;;  %v239_v14 = vmul.f32 (!%p150_p2), %v652_v12, %v652_v12  ;;  %v238_v15 = vmul.f32 (!%p150_p2), %v657_v13, %v657_v13  ;;  %v359_v3 = vstv (!%p150_p2), %s487_s8 }
   0xc   : > { %242 = vadd.xlane.f32.xlu0 (!%p150_p2), %v233_v6  ;;  %246 = vadd.xlane.f32.xlu1 (!%p150_p2), %v235_v7 }
   0xd   : > { %s704_s20 = smov (!%p179_p3, %s481_s20), 7 }
   0xe   : > { %s643_s27 = sshll.u32 %s704_s20, 3 }
   0xf   : > { %s182_s7 = scalar_lea.vmem %s699_s0, %s643_s27  ;;  %s188_s11 = scalar_lea.vmem %s700_s1, %s643_s27 }
  0x10   : > { %250 = vadd.xlane.f32.xlu1 %v237_v10  ;;  %248 = vadd.xlane.f32.xlu0 %v236_v11  ;;  %v196_v16 = vld [vmem:[%s182_s7] sm:$0xff]  ;;  %v667_v17 = vld [vmem:[%s182_s7 + $0x8] sm:$0xff]  ;;  %s194_s15 = scalar_lea.vmem %s702_s3, %s643_s27 }
  0x11   : > { %v208_v18 = vmul.f32 %v196_v16, %v196_v16  ;;  %v209_v19 = vmul.f32 %v667_v17, %v667_v17 }
  0x14   : > { %254 = vadd.xlane.f32.xlu1 %v239_v14  ;;  %252 = vadd.xlane.f32.xlu0 %v238_v15  ;;  %v198_v14 = vld [vmem:[%s188_s11] sm:$0xff] }
  0x18   : > { %210 = vadd.xlane.f32.xlu0 %v208_v18  ;;  %212 = vadd.xlane.f32.xlu1 %v209_v19  ;;  %v220_v18 = vmul.f32 %v198_v14, %v198_v14 }
  0x95   : > { %v241_v20 = vpop.xlane.xlu0 %240  ;;  %v245_v21 = vpop.xlane.xlu1 %244 }
  0x96   : > { %v256_v22 = vmax.f32 %v241_v20, 1e-16  ;;  %v258_v23 = vmax.f32 %v245_v21, 1e-16 }
  0x98   : > { %543 = vrsqrt.f32 %v258_v23 }
  0x99   : > { %v243_v24 = vpop.xlane.xlu0 %242  ;;  %v247_v25 = vpop.xlane.xlu1 %246  ;;  %545 = vrsqrt.f32 %v256_v22 }
  0x9a   : > { %v257_v26 = vmax.f32 %v243_v24, 1e-16  ;;  %v259_v27 = vmax.f32 %v247_v25, 1e-16 }
  0x9c   : > { %547 = vrsqrt.f32 %v257_v26 }
  0x9d   : > { %549 = vrsqrt.f32 %v259_v27  ;;  %v251_v28 = vpop.xlane.xlu1 %250  ;;  %v249_v29 = vpop.xlane.xlu0 %248 }
  0x9e   : > { %v261_v30 = vmax.f32 %v251_v28, 1e-16  ;;  %v260_v31 = vmax.f32 %v249_v29, 1e-16 }
  0xa0   : > { %551 = vrsqrt.f32 %v261_v30 }
  0xa1   : > { %553 = vrsqrt.f32 %v260_v31  ;;  %v255_v32 = vpop.xlane.xlu1 %254  ;;  %v253_v33 = vpop.xlane.xlu0 %252 }
  0xa2   : > { %v263_v34 = vmax.f32 %v255_v32, 1e-16  ;;  %v544_v35 = vpop.eup %543  ;;  %v262_v36 = vmax.f32 %v253_v33, 1e-16 }
  0xa3   : > { %v546_v37 = vpop.eup %545  ;;  %v274_v40 = vmul.f32 %v544_v35, %v202_v1 }
  0xa4   : > { %555 = vrsqrt.f32 %v263_v34  ;;  %v272_v43 = vmul.f32 %v546_v37, %v614_v0  ;;  %v356_v0 = vlaneseq }
  0xa5   : > { %v211_v38 = vpop.xlane.xlu0 %210  ;;  %557 = vrsqrt.f32 %v262_v36  ;;  %v213_v56 = vpop.xlane.xlu1 %212 }
  0xa6   : > { %v548_v39 = vpop.eup %547  ;;  %v214_v41 = vmax.f32 %v211_v38, 1e-16  ;;  %v215_v60 = vmax.f32 %v213_v56, 1e-16  ;;  %v357_v1 = vshrl.u32 %v356_v0, 7 }
  0xa7   : > { %v550_v42 = vpop.eup %549  ;;  %v273_v44 = vmul.f32 %v548_v39, %v622_v2 }
  0xa8   : > { %v275_v45 = vmul.f32 %v550_v42, %v203_v5  ;;  %559 = vrsqrt.f32 %v214_v41  ;;  %v358_v2 = vadd.s32 8, %v357_v1  ;;  %v363_v5 = vand.u32 127, %v356_v0 }
  0xa9   : > { %v519_v46 = vpack.c.bf16 %v273_v44, %v272_v43  ;;  %561 = vrsqrt.f32 %v215_v60  ;;  %v360_v6 = vadd.s32 %v359_v3, %v357_v1 }
  0xaa   : > { %v552_v47 = vpop.eup %551  ;;  %v523_v48 = vpack.c.bf16 %v275_v45, %v274_v40  ;;  %v361_v4 = vadd.s32 %v359_v3, %v358_v2 }
  0xab   : > { %v554_v49 = vpop.eup %553  ;;  %520 = vmatprep.subr.bf16.mxu0 %v519_v46  ;;  %v277_v51 = vmul.f32 %v552_v47, %v636_v8  ;;  %vm364_vm1 = vcmp.eq.s32.totalorder %v360_v6, %v363_v5 }
  0xac   : > { %522 = vmatpush3.bf16.xpose.msra.mxu0 %v519_v46  ;;  %v276_v50 = vmul.f32 %v554_v49, %v641_v9  ;;  %vm365_vm0 = vcmp.eq.s32.totalorder %v361_v4, %v363_v5 }
  0xad   : > { %524 = vmatprep.subr.bf16.mxu0 %v523_v48 }
  0xae   : > { %v556_v52 = vpop.eup %555  ;;  %v527_v54 = vpack.c.bf16 %v277_v51, %v276_v50 }
  0xaf   : > { %v558_v53 = vpop.eup %557  ;;  %v279_v59 = vmul.f32 %v556_v52, %v652_v12  ;;  %v199_v12 = vld [vmem:[%s188_s11 + $0x8] sm:$0xff] }
  0xb0   : > { %v278_v58 = vmul.f32 %v558_v53, %v657_v13 }
  0xb2   : > { %v560_v55 = vpop.eup %559  ;;  %v531_v61 = vpack.c.bf16 %v279_v59, %v278_v58 }
  0xb3   : > { %v675_v57 = vmul.f32 %v560_v55, %v196_v16  ;;  %v562_v62 = vpop.eup %561 }
  0xb4   : > { %526 = vmatpush3.bf16.xpose.msra.mxu0 %v523_v48  ;;  %v219_v63 = vmul.f32 %v562_v62, %v667_v17  ;;  %v221_v17 = vmul.f32 %v199_v12, %v199_v12 }
  0xb5   : > { %528 = vmatprep.subr.bf16.mxu0 %v527_v54  ;;  %516 = vmatprep.mubr.f32.mxu0 %v675_v57 }
  0xbc   : > { %530 = vmatpush3.bf16.xpose.msra.mxu0 %v527_v54 }
  0xbd   : > { %532 = vmatprep.subr.bf16.mxu0 %v531_v61 }
  0xc4   : > { %534 = vmatpush3.bf16.xpose.msra.mxu0 %v531_v61 }
  0xcb   : > { %517 = vmatmul.mubr.f32.vlgmr.msra.gmra.mrb[0].mxu0 %v219_v63 }
 0x19e   : > { %v518_v7 = vpop.f32.mrb[0].mxu0 }
 0x19f   : > { %v367_v8 = vsel %vm365_vm0, -1e+12, %v518_v7  ;;  %v346_v9 = vpop.f32.mrb[1].mxu0 }
 0x1a0   : > { %v369_v10 = vmul.f32 20.0, %v367_v8  ;;  %v366_v11 = vsel %vm364_vm1, -1e+12, %v346_v9 }
 0x1a1   : > { %v368_v13 = vmul.f32 20.0, %v366_v11 }
 0x1a2   : > { %v382_v15 = vsel %vm378_vm2, %v369_v10, -inf }
 0x1a3   : > { %383 = vmax.xlane.f32.xlu1 %v382_v15  ;;  %v379_v16 = vsel %vm378_vm2, %v368_v13, -inf }
 0x1a4   : > { %380 = vmax.xlane.f32.xlu0 %v379_v16 }
 0x1a7   : > { %224 = vadd.xlane.f32.xlu1 %v221_v17 }
 0x1a8   : > { %222 = vadd.xlane.f32.xlu0 %v220_v18 }
 0x230   : > { %v384_v19 = vpop.xlane.xlu1 %383 }
 0x231   : > { %v386_v20 = vsub.f32 %v369_v10, %v384_v19  ;;  %v381_v21 = vpop.xlane.xlu0 %380 }
 0x232   : > { %v385_v22 = vsub.f32 %v368_v13, %v381_v21 }
 0x233   : > { %v389_v23 = vmul.f32 1.442695, %v386_v20 }
 0x234   : > { %v387_v24 = vmul.f32 1.442695, %v385_v22  ;;  %v225_v25 = vpop.xlane.xlu1 %224 }
 0x235   : > { %563 = vpow2.f32 %v389_v23  ;;  %v227_v26 = vmax.f32 %v225_v25, 1e-16  ;;  %v223_v27 = vpop.xlane.xlu0 %222 }
 0x236   : > { %565 = vpow2.f32 %v387_v24  ;;  %v226_v28 = vmax.f32 %v223_v27, 1e-16 }
 0x237   : > { %567 = vrsqrt.f32 %v227_v26 }
 0x238   : > { %569 = vrsqrt.f32 %v226_v28 }
 0x23f   : > { %v564_v29 = vpop.eup %563 }
 0x240   : > { %v566_v30 = vpop.eup %565  ;;  %v394_v31 = vsel %vm378_vm2, %v564_v29, 0.0 }
 0x241   : > { %v568_v32 = vpop.eup %567  ;;  %395 = vadd.xlane.f32.xlu1 %v394_v31  ;;  %v391_v33 = vsel %vm378_vm2, %v566_v30, 0.0 }
 0x242   : > { %v570_v34 = vpop.eup %569  ;;  %392 = vadd.xlane.f32.xlu0 %v391_v33  ;;  %v231_v35 = vmul.f32 %v568_v32, %v199_v12 }
 0x243   : > { %v230_v36 = vmul.f32 %v570_v34, %v198_v14 }
 0x244   : > { %v371_v37 = vmul.f32 %v231_v35, %v219_v63 }
 0x245   : > { %v370_v38 = vmul.f32 %v230_v36, %v675_v57 }
 0x246   : > { %374 = vadd.xlane.f32.xlu1 %v371_v37 }
 0x247   : > { %372 = vadd.xlane.f32.xlu0 %v370_v38 }
 0x2ce   : > { %v396_v39 = vpop.xlane.xlu1 %395 }
 0x2cf   : > { %571 = vlog2.f32 %v396_v39  ;;  %v393_v40 = vpop.xlane.xlu0 %392 }
 0x2d0   : > { %573 = vlog2.f32 %v393_v40 }
 0x2d3   : > { %v375_v46 = vpop.xlane.xlu1 %374 }
 0x2d4   : > { %v373_v44 = vpop.xlane.xlu0 %372  ;;  %v377_v50 = vmul.f32 20.0, %v375_v46 }
 0x2d5   : > { %v376_v49 = vmul.f32 20.0, %v373_v44 }
 0x2d9   : > { %v572_v41 = vpop.eup %571 }
 0x2da   : > { %v574_v42 = vpop.eup %573  ;;  %v400_v43 = vmul.f32 0.6931472, %v572_v41 }
 0x2db   : > { %v398_v45 = vmul.f32 0.6931472, %v574_v42 }
 0x2dc   : > { %v402_v47 = vadd.f32 %v400_v43, %v384_v19 }
 0x2dd   : > { %v401_v48 = vadd.f32 %v398_v45, %v381_v21 }
 0x2de   : > { %v404_v52 = vsub.f32 %v402_v47, %v377_v50 }
 0x2df   : > { %v403_v51 = vsub.f32 %v401_v48, %v376_v49 }
 0x2e0   : > { %407 = vst.msk [vmem:[%s194_s15 + $0x8] sm:$0xff] %vm405_vm3, %v404_v52 }
 0x2e1   : > { %406 = vst.msk [vmem:[%s194_s15] sm:$0xff] %vm405_vm3, %v403_v51 }
 0x2e2 PF: > { %s13_s12 = sadd.s32 1, %s581_s12  }
 0x2e3   : > { %p10_p4 = scmp.ge.s32.totalorder %s13_s12, 6  }
 0x2e5   :  { %12 = sbr.rel (!%p10_p4) target bundleno = 1 (0x1), region = 65 }

</bundles_post_ra>
